<compile_context>
chip_gen: v6e
topology: v6e:2x2x1
jax: 0.10.0
libtpu: 0.0.40
codegen_flags: <defaults>
</compile_context>

<pallas_src>
import functools

import jax
import jax.numpy as jnp
from jax import lax
from jax.experimental import pallas as pl
from jax.experimental.pallas import tpu as pltpu

_BN_EPS = 1e-5


# ----------------------------------------------------------------------------- helpers

def _bn_fold(gamma, beta, mean, var):
    scale = gamma / jnp.sqrt(var + _BN_EPS)
    bias = beta - mean * scale
    return scale, bias


def _pad_bytes(rows, cols, itemsize=4):
    """Bytes of a 2D f32 array padded to the (8, 128) vreg tiling."""
    return ((rows + 7) // 8 * 8) * ((cols + 127) // 128 * 128) * itemsize


def _estimate_vmem_bytes(tr, W, Cin, Cexp, Cout):
    SP = (tr + 2) * W + 2
    L = tr * W
    blocks = (2 * _pad_bytes(Cin, SP)        # double-buffered input slab
              + 2 * _pad_bytes(Cout, L)      # double-buffered output tile
              + _pad_bytes(Cexp, SP))        # expanded-slab scratch (single copy)
    consts = 2 * (_pad_bytes(Cexp, Cin) + 2 * _pad_bytes(Cexp, 1) + _pad_bytes(Cexp, 9)
                  + _pad_bytes(Cout, Cexp) + _pad_bytes(Cout, 1) + _pad_bytes(2, L))
    return blocks + consts


def _vmem_capacity_bytes():
    try:
        return int(pltpu.get_tpu_info().vmem_capacity_bytes)
    except Exception:
        return 64 * 1024 * 1024        # conservative: v7x per-TensorCore VMEM


def _pick_row_tile(H, W, N, Cin, Cexp, Cout, budget):
    """Largest row tile whose working set fits the VMEM budget.

    Constraint: tr divides H and (tr == H or tr*W % 128 == 0) so the lane-dense output
    block obeys the (8, 128) BlockSpec rule.  Keep >= 2 grid steps so both v7x
    TensorCores get work.
    """
    valid = [tr for tr in range(1, H + 1)
             if H % tr == 0 and (tr == H or (tr * W) % 128 == 0)]
    fitting = [tr for tr in valid
               if _estimate_vmem_bytes(tr, W, Cin, Cexp, Cout) <= budget]
    cands = fitting if fitting else valid[:1]
    tr = max(cands)
    if N * (H // tr) < 2:
        smaller = [t for t in cands if N * (H // t) >= 2]
        if smaller:
            tr = max(smaller)
    return tr


# ----------------------------------------------------------------- fused kernel (stride == 1)

def _fused_block_s1_kernel(x_ref, w1_ref, b1_ref, wdw_ref, b2_ref, w3_ref, b3_ref,
                           cm_ref, o_ref, xe_ref, *, row_tile, width):
    # x_ref:   (1, 1, Cin, SP)   halo input slab, SP = (tr+2)*W + 2 (1 dummy element at each
    #                            end so every 3x3 tap is an in-bounds contiguous lane slice)
    # w1_ref:  (Cexp, Cin)       1x1 expansion weight, BN1 scale folded in
    # b1_ref:  (Cexp, 1)         folded BN1 bias
    # wdw_ref: (Cexp, 9)         flipped depthwise kernel (kh*3+kw), BN2 scale folded in
    # b2_ref:  (Cexp, 1)         folded BN2 bias
    # w3_ref:  (Cout, Cexp)      1x1 projection weight, BN3 scale folded in
    # b3_ref:  (Cout, 1)         folded BN3 bias
    # cm_ref:  (2, L)            column masks killing the left/right row-wrap taps
    # o_ref:   (1, Cout, L)      NCHW output tile, L = tr*W (lane-dense, multiple of 128)
    # xe_ref:  (Cexp, SP)        VMEM scratch: expanded + activated slab
    tr, W = row_tile, width
    S = (tr + 2) * W
    L = tr * W
    Cexp = xe_ref.shape[0]
    r = pl.program_id(1)
    n_r = pl.num_programs(1)

    # ---- stage 1: 1x1 expansion + BN + ReLU6 — ONE matmul for the whole halo slab ----
    x2 = x_ref[0, 0]                                                  # (Cin, SP)
    e = jnp.dot(w1_ref[...], x2, preferred_element_type=jnp.float32)  # (Cexp, SP)
    e = jnp.clip(e + b1_ref[...], 0.0, 6.0)
    xe_ref[...] = e            # full overwrite every step; no per-step scratch zeroing

    # Halo rows outside the image must be exactly zero (conv-transpose zero padding happens
    # AFTER the expansion), not relu6(bn_bias); only the first/last row tile has such rows.
    @pl.when(r == 0)
    def _():
        xe_ref[:, 1:1 + W] = jnp.zeros((Cexp, W), jnp.float32)

    @pl.when(r == n_r - 1)
    def _():
        xe_ref[:, 1 + (tr + 1) * W:1 + S] = jnp.zeros((Cexp, W), jnp.float32)

    # ---- stage 2: 3x3 depthwise ConvTranspose (s=1, p=1) == conv with flipped kernel ----
    # Slab element (1 + i*W + j) holds row (r*tr + i - 1), col j.  Output position
    # f = oi*W + oj needs slab index f + kh*W + kw; taps with (oj+kw-1) outside [0, W)
    # are row-wrap artifacts and are zeroed by the column masks.
    cm0 = cm_ref[0:1, :]
    cm2 = cm_ref[1:2, :]
    acc = jnp.zeros((Cexp, L), jnp.float32)
    for kh in range(3):
        for kw in range(3):
            k = kh * 3 + kw
            w_k = wdw_ref[:, k:k + 1]                                 # (Cexp, 1)
            term = xe_ref[:, kh * W + kw:kh * W + kw + L] * w_k
            if kw == 0:
                term = term * cm0
            elif kw == 2:
                term = term * cm2
            acc = acc + term
    acc = jnp.clip(acc + b2_ref[...], 0.0, 6.0)                       # (Cexp, L)

    # ---- stage 3: 1x1 projection + BN — ONE matmul + one lane-dense NCHW store ----
    out = jnp.dot(w3_ref[...], acc, preferred_element_type=jnp.float32) + b3_ref[...]
    o_ref[0] = out.astype(o_ref.dtype)                                # (Cout, L)


def _fused_forward_s1(x_nchw, params):
    """Fused expansion + depthwise-transpose(s=1) + projection.  NCHW in, NCHW out."""
    N, Cin, H, W = x_nchw.shape
    x = x_nchw.astype(jnp.float32)

    s1, b1 = _bn_fold(params["bn1_gamma"], params["bn1_beta"],
                      params["bn1_mean"], params["bn1_var"])
    w1 = params["w_exp"][:, :, 0, 0] * s1[:, None]                   # (Cexp, Cin)
    Cexp = w1.shape[0]

    s2, b2 = _bn_fold(params["bn2_gamma"], params["bn2_beta"],
                      params["bn2_mean"], params["bn2_var"])
    wdw = jnp.flip(params["w_dw"][:, 0, :, :], axis=(1, 2)) * s2[:, None, None]
    wdw = wdw.reshape(Cexp, 9)                                        # (Cexp, 9)

    s3, b3 = _bn_fold(params["bn3_gamma"], params["bn3_beta"],
                      params["bn3_mean"], params["bn3_var"])
    w3 = params["w_pw"][:, :, 0, 0].T * s3[:, None]                   # (Cout, Cexp)
    Cout = w3.shape[0]

    cap = _vmem_capacity_bytes()
    tr = _pick_row_tile(H, W, N, Cin, Cexp, Cout, cap // 2)
    R = H // tr
    S = (tr + 2) * W
    SP = S + 2
    L = tr * W

    # Halo-tiled, row-flattened NCHW input: per (image, row tile) a (Cin, SP) slab holding
    # rows [r*tr - 1, r*tr + tr] (zero rows beyond the image) plus one dummy element at each
    # end of the flattened axis.  Input VMEM scales with the tile, not the image.
    xp = jnp.pad(x, ((0, 0), (0, 0), (1, 1), (0, 0)))                 # (N, Cin, H+2, W)
    row_idx = jnp.arange(R)[:, None] * tr + jnp.arange(tr + 2)[None, :]
    xt = xp[:, :, row_idx, :]                                         # (N, Cin, R, tr+2, W)
    xt = jnp.transpose(xt, (0, 2, 1, 3, 4)).reshape(N, R, Cin, S)
    xt = jnp.pad(xt, ((0, 0), (0, 0), (0, 0), (1, 1)))                # (N, R, Cin, SP)

    # Column masks killing the row-wrap taps of the flattened 3x3 conv.
    j = jnp.arange(L) % W
    colmask = jnp.stack([(j != 0), (j != W - 1)]).astype(jnp.float32)  # (2, L)

    est = _estimate_vmem_bytes(tr, W, Cin, Cexp, Cout)
    vmem_limit = max(2 * est + (4 << 20), 16 << 20)
    vmem_limit = min(vmem_limit, cap - (8 << 20))
    vmem_limit = int(max(vmem_limit, est + (2 << 20)))

    kernel = functools.partial(_fused_block_s1_kernel, row_tile=tr, width=W)
    out = pl.pallas_call(
        kernel,
        out_shape=jax.ShapeDtypeStruct((N, Cout, H * W), jnp.float32),
        grid=(N, R),
        in_specs=[
            pl.BlockSpec((1, 1, Cin, SP), lambda n, r: (n, r, 0, 0)),
            pl.BlockSpec((Cexp, Cin), lambda n, r: (0, 0)),
            pl.BlockSpec((Cexp, 1), lambda n, r: (0, 0)),
            pl.BlockSpec((Cexp, 9), lambda n, r: (0, 0)),
            pl.BlockSpec((Cexp, 1), lambda n, r: (0, 0)),
            pl.BlockSpec((Cout, Cexp), lambda n, r: (0, 0)),
            pl.BlockSpec((Cout, 1), lambda n, r: (0, 0)),
            pl.BlockSpec((2, L), lambda n, r: (0, 0)),
        ],
        out_specs=pl.BlockSpec((1, Cout, L), lambda n, r: (n, 0, r)),
        scratch_shapes=[pltpu.VMEM((Cexp, SP), jnp.float32)],
        compiler_params=pltpu.CompilerParams(
            dimension_semantics=("parallel", "parallel"),
            vmem_limit_bytes=vmem_limit),
    )(xt, w1, b1.reshape(Cexp, 1), wdw, b2.reshape(Cexp, 1),
      w3, b3.reshape(Cout, 1), colmask)
    return out.reshape(N, Cout, H, W)


# ----------------------------------------------------------------------------- XLA fallback

def _xla_forward(x_nchw, params, *, stride=1):
    """Pure-JAX/XLA implementation (reference; also the stride > 1 fallback)."""
    def bn(y, g, b, m, v):  # channels-last
        return (y - m) / jnp.sqrt(v + _BN_EPS) * g + b

    x = jnp.transpose(x_nchw, (0, 2, 3, 1)).astype(jnp.float32)
    w1 = params["w_exp"][:, :, 0, 0].T
    y = jnp.einsum("nhwc,cd->nhwd", x, w1)
    y = jnp.clip(bn(y, params["bn1_gamma"], params["bn1_beta"],
                    params["bn1_mean"], params["bn1_var"]), 0.0, 6.0)

    out_pad = 0 if stride == 1 else 1
    w_dw = params["w_dw"]                                       # (C, 1, 3, 3)
    w_hwio = jnp.flip(w_dw, axis=(2, 3)).transpose(2, 3, 1, 0)  # (3, 3, 1, C)
    y = lax.conv_general_dilated(
        y, w_hwio, window_strides=(1, 1),
        padding=((1, 1 + out_pad), (1, 1 + out_pad)),
        lhs_dilation=(stride, stride),
        dimension_numbers=("NHWC", "HWIO", "NHWC"),
        feature_group_count=w_dw.shape[0])
    y = jnp.clip(bn(y, params["bn2_gamma"], params["bn2_beta"],
                    params["bn2_mean"], params["bn2_var"]), 0.0, 6.0)

    w3 = params["w_pw"][:, :, 0, 0]
    z = jnp.einsum("nhwc,cd->nhwd", y, w3)
    z = bn(z, params["bn3_gamma"], params["bn3_beta"],
           params["bn3_mean"], params["bn3_var"])
    return jnp.transpose(z, (0, 3, 1, 2))


reference_forward = _xla_forward


# ----------------------------------------------------------------------------- public forward

def inverted_residual_block_transpose(x_nchw, params, *, stride=1):
    """Forward pass matching the PyTorch module (input/output are NCHW)."""
    if stride == 1:
        return _fused_forward_s1(x_nchw, params)
    # TODO(synk): stride > 1 zero-inserted ConvTranspose path is not a Pallas kernel.
    return _xla_forward(x_nchw, params, stride=stride)


# ----------------------------------------------------------------------------- params

def init_params(key, in_channels, out_channels, t):
    Cexp = in_channels * t
    ks = jax.random.split(key, 16)

    def rnd(k, shape, scale=0.1):
        return scale * jax.random.normal(k, shape, dtype=jnp.float32)

    return dict(
        # Conv2d weight (OIHW): (Cexp, Cin, 1, 1)
        w_exp=rnd(ks[0], (Cexp, in_channels, 1, 1)),
        bn1_gamma=1.0 + rnd(ks[1], (Cexp,)),
        bn1_beta=rnd(ks[2], (Cexp,)),
        bn1_mean=rnd(ks[3], (Cexp,)),
        bn1_var=jnp.abs(1.0 + rnd(ks[4], (Cexp,))),
        # ConvTranspose2d depthwise weight (I, O/g, kH, kW): (Cexp, 1, 3, 3)
        w_dw=rnd(ks[5], (Cexp, 1, 3, 3)),
        bn2_gamma=1.0 + rnd(ks[6], (Cexp,)),
        bn2_beta=rnd(ks[7], (Cexp,)),
        bn2_mean=rnd(ks[8], (Cexp,)),
        bn2_var=jnp.abs(1.0 + rnd(ks[9], (Cexp,))),
        # ConvTranspose2d pointwise weight (I, O, 1, 1): (Cexp, Cout, 1, 1)
        w_pw=rnd(ks[10], (Cexp, out_channels, 1, 1)),
        bn3_gamma=1.0 + rnd(ks[11], (out_channels,)),
        bn3_beta=rnd(ks[12], (out_channels,)),
        bn3_mean=rnd(ks[13], (out_channels,)),
        bn3_var=jnp.abs(1.0 + rnd(ks[14], (out_channels,))),
    )


# ----------------------------------------------------------------------------- main

if __name__ == "__main__":
    key = jax.random.PRNGKey(0)
    kp, kx = jax.random.split(key)

    in_channels, out_channels, t, stride = 4, 8, 6, 1
    N, H, W = 2, 16, 16

    params = init_params(kp, in_channels, out_channels, t)
    x = jax.random.normal(kx, (N, in_channels, H, W), dtype=jnp.float32)

    fwd = jax.jit(lambda xx, pp: inverted_residual_block_transpose(xx, pp, stride=1))
    out = jax.block_until_ready(fwd(x, params))

    ref = reference_forward(x, params, stride=stride)
    assert out.shape == ref.shape == (N, out_channels, H, W), (out.shape, ref.shape)
    max_err = float(jnp.max(jnp.abs(out - ref)))
    assert max_err < 1e-3, f"max abs error {max_err}"

    print("KERNEL_OK")
</pallas_src>

<mosaic_0001>
module attributes {stable_mosaic.version = 11 : i64} {
  func.func @_fused_block_s1_kernel(%arg0: i32, %arg1: i32, %arg2: memref<1x1x4x290xf32, #tpu.memory_space<vmem>>, %arg3: memref<24x4xf32, #tpu.memory_space<vmem>>, %arg4: memref<24x1xf32, #tpu.memory_space<vmem>>, %arg5: memref<24x9xf32, #tpu.memory_space<vmem>>, %arg6: memref<24x1xf32, #tpu.memory_space<vmem>>, %arg7: memref<8x24xf32, #tpu.memory_space<vmem>>, %arg8: memref<8x1xf32, #tpu.memory_space<vmem>>, %arg9: memref<2x256xf32, #tpu.memory_space<vmem>>, %arg10: memref<1x8x256xf32, #tpu.memory_space<vmem>>, %arg11: memref<24x290xf32, #tpu.memory_space<vmem>>) attributes {dimension_semantics = [#tpu.dimension_semantics<parallel>, #tpu.dimension_semantics<parallel>], iteration_bounds = array<i64: 2, 1>, scalar_prefetch = 0 : i64, scratch_operands = 1 : i64, tpu.core_type = #tpu.core_type<tc>, window_params = [{transform_indices = @transform_0, window_bounds = array<i64: 1, 1, 4, 290>}, {pipeline_mode = #tpu.pipeline_mode<synchronous>, transform_indices = @transform_1, window_bounds = array<i64: 24, 4>}, {pipeline_mode = #tpu.pipeline_mode<synchronous>, transform_indices = @transform_2, window_bounds = array<i64: 24, 1>}, {pipeline_mode = #tpu.pipeline_mode<synchronous>, transform_indices = @transform_3, window_bounds = array<i64: 24, 9>}, {pipeline_mode = #tpu.pipeline_mode<synchronous>, transform_indices = @transform_4, window_bounds = array<i64: 24, 1>}, {pipeline_mode = #tpu.pipeline_mode<synchronous>, transform_indices = @transform_5, window_bounds = array<i64: 8, 24>}, {pipeline_mode = #tpu.pipeline_mode<synchronous>, transform_indices = @transform_6, window_bounds = array<i64: 8, 1>}, {pipeline_mode = #tpu.pipeline_mode<synchronous>, transform_indices = @transform_7, window_bounds = array<i64: 2, 256>}, {transform_indices = @transform_8, window_bounds = array<i64: 1, 8, 256>}]} {
    %c0 = arith.constant 0 : index
    %c0_0 = arith.constant 0 : index
    %c0_1 = arith.constant 0 : index
    %c0_2 = arith.constant 0 : index
    %0 = vector.load %arg2[%c0, %c0_0, %c0_1, %c0_2] : memref<1x1x4x290xf32, #tpu.memory_space<vmem>>, vector<1x1x4x290xf32>
    %1 = vector.shape_cast %0 : vector<1x1x4x290xf32> to vector<4x290xf32>
    %c0_3 = arith.constant 0 : index
    %c0_4 = arith.constant 0 : index
    %2 = vector.load %arg3[%c0_3, %c0_4] : memref<24x4xf32, #tpu.memory_space<vmem>>, vector<24x4xf32>
    %cst = arith.constant dense<0.000000e+00> : vector<24x290xf32>
    %3 = tpu.matmul %2, %1, %cst {dimension_numbers = #tpu.dot_dimension_numbers<[1], [0], [0], [1], [0, 0, 1, 1], [], []>} : vector<24x4xf32>, vector<4x290xf32>, vector<24x290xf32> -> vector<24x290xf32>
    %c0_5 = arith.constant 0 : index
    %c0_6 = arith.constant 0 : index
    %4 = vector.load %arg4[%c0_5, %c0_6] : memref<24x1xf32, #tpu.memory_space<vmem>>, vector<24x1xf32>
    %5 = vector.broadcast %4 : vector<24x1xf32> to vector<24x290xf32>
    %6 = arith.addf %3, %5 : vector<24x290xf32>
    %cst_7 = arith.constant 0.000000e+00 : f32
    %cst_8 = arith.constant 6.000000e+00 : f32
    %7 = vector.broadcast %cst_7 : f32 to vector<24x290xf32>
    %8 = arith.maximumf %7, %6 : vector<24x290xf32>
    %9 = vector.broadcast %cst_8 : f32 to vector<24x290xf32>
    %10 = arith.minimumf %9, %8 : vector<24x290xf32>
    %c0_9 = arith.constant 0 : index
    %c0_10 = arith.constant 0 : index
    %11 = vector.load %arg11[%c0_9, %c0_10] : memref<24x290xf32, #tpu.memory_space<vmem>>, vector<24x290xf32>
    tpu.vector_store %arg11[%c0_9, %c0_10], %10 {strides = array<i32>} : memref<24x290xf32, #tpu.memory_space<vmem>>, vector<24x290xf32>,
    %c0_i32 = arith.constant 0 : i32
    %12 = arith.cmpi eq, %arg1, %c0_i32 : i32
    %13 = arith.extui %12 : i1 to i32
    %c0_i32_11 = arith.constant 0 : i32
    %14 = arith.cmpi ne, %13, %c0_i32_11 : i32
    scf.if %14 {
      %cst_53 = arith.constant 0.000000e+00 : f32
      %93 = vector.broadcast %cst_53 : f32 to vector<24x16xf32>
      %c0_54 = arith.constant 0 : index
      %c1_55 = arith.constant 1 : index
      %94 = vector.load %arg11[%c0_54, %c1_55] : memref<24x290xf32, #tpu.memory_space<vmem>>, vector<24x16xf32>
      tpu.vector_store %arg11[%c0_54, %c1_55], %93 {strides = array<i32>} : memref<24x290xf32, #tpu.memory_space<vmem>>, vector<24x16xf32>,
    } else {
    }
    %c0_i32_12 = arith.constant 0 : i32
    %15 = arith.cmpi eq, %arg1, %c0_i32_12 : i32
    %16 = arith.extui %15 : i1 to i32
    %c0_i32_13 = arith.constant 0 : i32
    %17 = arith.cmpi ne, %16, %c0_i32_13 : i32
    scf.if %17 {
      %cst_53 = arith.constant 0.000000e+00 : f32
      %93 = vector.broadcast %cst_53 : f32 to vector<24x16xf32>
      %c0_54 = arith.constant 0 : index
      %c273 = arith.constant 273 : index
      %94 = vector.load %arg11[%c0_54, %c273] : memref<24x290xf32, #tpu.memory_space<vmem>>, vector<24x16xf32>
      tpu.vector_store %arg11[%c0_54, %c273], %93 {strides = array<i32>} : memref<24x290xf32, #tpu.memory_space<vmem>>, vector<24x16xf32>,
    } else {
    }
    %c0_14 = arith.constant 0 : index
    %c0_15 = arith.constant 0 : index
    %18 = vector.load %arg9[%c0_14, %c0_15] : memref<2x256xf32, #tpu.memory_space<vmem>>, vector<1x256xf32>
    %c1 = arith.constant 1 : index
    %c0_16 = arith.constant 0 : index
    %19 = vector.load %arg9[%c1, %c0_16] : memref<2x256xf32, #tpu.memory_space<vmem>>, vector<1x256xf32>
    %cst_17 = arith.constant 0.000000e+00 : f32
    %20 = vector.broadcast %cst_17 : f32 to vector<24x256xf32>
    %c0_18 = arith.constant 0 : index
    %c0_19 = arith.constant 0 : index
    %21 = vector.load %arg5[%c0_18, %c0_19] : memref<24x9xf32, #tpu.memory_space<vmem>>, vector<24x1xf32>
    %c0_20 = arith.constant 0 : index
    %c0_21 = arith.constant 0 : index
    %22 = vector.load %arg11[%c0_20, %c0_21] : memref<24x290xf32, #tpu.memory_space<vmem>>, vector<24x256xf32>
    %23 = vector.broadcast %21 : vector<24x1xf32> to vector<24x256xf32>
    %24 = arith.mulf %22, %23 : vector<24x256xf32>
    %25 = vector.broadcast %18 : vector<1x256xf32> to vector<24x256xf32>
    %26 = arith.mulf %24, %25 : vector<24x256xf32>
    %27 = arith.addf %20, %26 : vector<24x256xf32>
    %c0_22 = arith.constant 0 : index
    %c1_23 = arith.constant 1 : index
    %28 = vector.load %arg5[%c0_22, %c1_23] : memref<24x9xf32, #tpu.memory_space<vmem>>, vector<24x1xf32>
    %c0_24 = arith.constant 0 : index
    %c1_25 = arith.constant 1 : index
    %29 = vector.load %arg11[%c0_24, %c1_25] : memref<24x290xf32, #tpu.memory_space<vmem>>, vector<24x256xf32>
    %30 = vector.broadcast %28 : vector<24x1xf32> to vector<24x256xf32>
    %31 = arith.mulf %29, %30 : vector<24x256xf32>
    %32 = arith.addf %27, %31 : vector<24x256xf32>
    %c0_26 = arith.constant 0 : index
    %c2 = arith.constant 2 : index
    %33 = vector.load %arg5[%c0_26, %c2] : memref<24x9xf32, #tpu.memory_space<vmem>>, vector<24x1xf32>
    %c0_27 = arith.constant 0 : index
    %c2_28 = arith.constant 2 : index
    %34 = vector.load %arg11[%c0_27, %c2_28] : memref<24x290xf32, #tpu.memory_space<vmem>>, vector<24x256xf32>
    %35 = vector.broadcast %33 : vector<24x1xf32> to vector<24x256xf32>
    %36 = arith.mulf %34, %35 : vector<24x256xf32>
    %37 = vector.broadcast %19 : vector<1x256xf32> to vector<24x256xf32>
    %38 = arith.mulf %36, %37 : vector<24x256xf32>
    %39 = arith.addf %32, %38 : vector<24x256xf32>
    %c0_29 = arith.constant 0 : index
    %c3 = arith.constant 3 : index
    %40 = vector.load %arg5[%c0_29, %c3] : memref<24x9xf32, #tpu.memory_space<vmem>>, vector<24x1xf32>
    %c0_30 = arith.constant 0 : index
    %c16 = arith.constant 16 : index
    %41 = vector.load %arg11[%c0_30, %c16] : memref<24x290xf32, #tpu.memory_space<vmem>>, vector<24x256xf32>
    %42 = vector.broadcast %40 : vector<24x1xf32> to vector<24x256xf32>
    %43 = arith.mulf %41, %42 : vector<24x256xf32>
    %44 = vector.broadcast %18 : vector<1x256xf32> to vector<24x256xf32>
    %45 = arith.mulf %43, %44 : vector<24x256xf32>
    %46 = arith.addf %39, %45 : vector<24x256xf32>
    %c0_31 = arith.constant 0 : index
    %c4 = arith.constant 4 : index
    %47 = vector.load %arg5[%c0_31, %c4] : memref<24x9xf32, #tpu.memory_space<vmem>>, vector<24x1xf32>
    %c0_32 = arith.constant 0 : index
    %c17 = arith.constant 17 : index
    %48 = vector.load %arg11[%c0_32, %c17] : memref<24x290xf32, #tpu.memory_space<vmem>>, vector<24x256xf32>
    %49 = vector.broadcast %47 : vector<24x1xf32> to vector<24x256xf32>
    %50 = arith.mulf %48, %49 : vector<24x256xf32>
    %51 = arith.addf %46, %50 : vector<24x256xf32>
    %c0_33 = arith.constant 0 : index
    %c5 = arith.constant 5 : index
    %52 = vector.load %arg5[%c0_33, %c5] : memref<24x9xf32, #tpu.memory_space<vmem>>, vector<24x1xf32>
    %c0_34 = arith.constant 0 : index
    %c18 = arith.constant 18 : index
    %53 = vector.load %arg11[%c0_34, %c18] : memref<24x290xf32, #tpu.memory_space<vmem>>, vector<24x256xf32>
    %54 = vector.broadcast %52 : vector<24x1xf32> to vector<24x256xf32>
    %55 = arith.mulf %53, %54 : vector<24x256xf32>
    %56 = vector.broadcast %19 : vector<1x256xf32> to vector<24x256xf32>
    %57 = arith.mulf %55, %56 : vector<24x256xf32>
    %58 = arith.addf %51, %57 : vector<24x256xf32>
    %c0_35 = arith.constant 0 : index
    %c6 = arith.constant 6 : index
    %59 = vector.load %arg5[%c0_35, %c6] : memref<24x9xf32, #tpu.memory_space<vmem>>, vector<24x1xf32>
    %c0_36 = arith.constant 0 : index
    %c32 = arith.constant 32 : index
    %60 = vector.load %arg11[%c0_36, %c32] : memref<24x290xf32, #tpu.memory_space<vmem>>, vector<24x256xf32>
    %61 = vector.broadcast %59 : vector<24x1xf32> to vector<24x256xf32>
    %62 = arith.mulf %60, %61 : vector<24x256xf32>
    %63 = vector.broadcast %18 : vector<1x256xf32> to vector<24x256xf32>
    %64 = arith.mulf %62, %63 : vector<24x256xf32>
    %65 = arith.addf %58, %64 : vector<24x256xf32>
    %c0_37 = arith.constant 0 : index
    %c7 = arith.constant 7 : index
    %66 = vector.load %arg5[%c0_37, %c7] : memref<24x9xf32, #tpu.memory_space<vmem>>, vector<24x1xf32>
    %c0_38 = arith.constant 0 : index
    %c33 = arith.constant 33 : index
    %67 = vector.load %arg11[%c0_38, %c33] : memref<24x290xf32, #tpu.memory_space<vmem>>, vector<24x256xf32>
    %68 = vector.broadcast %66 : vector<24x1xf32> to vector<24x256xf32>
    %69 = arith.mulf %67, %68 : vector<24x256xf32>
    %70 = arith.addf %65, %69 : vector<24x256xf32>
    %c0_39 = arith.constant 0 : index
    %c8 = arith.constant 8 : index
    %71 = vector.load %arg5[%c0_39, %c8] : memref<24x9xf32, #tpu.memory_space<vmem>>, vector<24x1xf32>
    %c0_40 = arith.constant 0 : index
    %c34 = arith.constant 34 : index
    %72 = vector.load %arg11[%c0_40, %c34] : memref<24x290xf32, #tpu.memory_space<vmem>>, vector<24x256xf32>
    %73 = vector.broadcast %71 : vector<24x1xf32> to vector<24x256xf32>
    %74 = arith.mulf %72, %73 : vector<24x256xf32>
    %75 = vector.broadcast %19 : vector<1x256xf32> to vector<24x256xf32>
    %76 = arith.mulf %74, %75 : vector<24x256xf32>
    %77 = arith.addf %70, %76 : vector<24x256xf32>
    %c0_41 = arith.constant 0 : index
    %c0_42 = arith.constant 0 : index
    %78 = vector.load %arg6[%c0_41, %c0_42] : memref<24x1xf32, #tpu.memory_space<vmem>>, vector<24x1xf32>
    %79 = vector.broadcast %78 : vector<24x1xf32> to vector<24x256xf32>
    %80 = arith.addf %77, %79 : vector<24x256xf32>
    %cst_43 = arith.constant 0.000000e+00 : f32
    %cst_44 = arith.constant 6.000000e+00 : f32
    %81 = vector.broadcast %cst_43 : f32 to vector<24x256xf32>
    %82 = arith.maximumf %81, %80 : vector<24x256xf32>
    %83 = vector.broadcast %cst_44 : f32 to vector<24x256xf32>
    %84 = arith.minimumf %83, %82 : vector<24x256xf32>
    %c0_45 = arith.constant 0 : index
    %c0_46 = arith.constant 0 : index
    %85 = vector.load %arg7[%c0_45, %c0_46] : memref<8x24xf32, #tpu.memory_space<vmem>>, vector<8x24xf32>
    %cst_47 = arith.constant dense<0.000000e+00> : vector<8x256xf32>
    %86 = tpu.matmul %85, %84, %cst_47 {dimension_numbers = #tpu.dot_dimension_numbers<[1], [0], [0], [1], [0, 0, 1, 1], [], []>} : vector<8x24xf32>, vector<24x256xf32>, vector<8x256xf32> -> vector<8x256xf32>
    %c0_48 = arith.constant 0 : index
    %c0_49 = arith.constant 0 : index
    %87 = vector.load %arg8[%c0_48, %c0_49] : memref<8x1xf32, #tpu.memory_space<vmem>>, vector<8x1xf32>
    %88 = vector.broadcast %87 : vector<8x1xf32> to vector<8x256xf32>
    %89 = arith.addf %86, %88 : vector<8x256xf32>
    %c0_50 = arith.constant 0 : index
    %c0_51 = arith.constant 0 : index
    %c0_52 = arith.constant 0 : index
    %90 = vector.load %arg10[%c0_50, %c0_51, %c0_52] : memref<1x8x256xf32, #tpu.memory_space<vmem>>, vector<1x8x256xf32>
    %91 = vector.shape_cast %90 : vector<1x8x256xf32> to vector<8x256xf32>
    %92 = vector.shape_cast %89 : vector<8x256xf32> to vector<1x8x256xf32>
    tpu.vector_store %arg10[%c0_50, %c0_51, %c0_52], %92 {strides = array<i32>} : memref<1x8x256xf32, #tpu.memory_space<vmem>>, vector<1x8x256xf32>,
    return
  }
  func.func @transform_0(%arg0: i32, %arg1: i32) -> (i32, i32, i32, i32) {
    %c0_i32 = arith.constant 0 : i32
    %c0_i32_0 = arith.constant 0 : i32
    %c0_i32_1 = arith.constant 0 : i32
    return %arg0, %arg1, %c0_i32, %c0_i32_0 : i32, i32, i32, i32
  }
  func.func @transform_1(%arg0: i32, %arg1: i32) -> (i32, i32) {
    %c0_i32 = arith.constant 0 : i32
    %c0_i32_0 = arith.constant 0 : i32
    %c0_i32_1 = arith.constant 0 : i32
    return %c0_i32, %c0_i32_0 : i32, i32
  }
  func.func @transform_2(%arg0: i32, %arg1: i32) -> (i32, i32) {
    %c0_i32 = arith.constant 0 : i32
    %c0_i32_0 = arith.constant 0 : i32
    %c0_i32_1 = arith.constant 0 : i32
    return %c0_i32, %c0_i32_0 : i32, i32
  }
  func.func @transform_3(%arg0: i32, %arg1: i32) -> (i32, i32) {
    %c0_i32 = arith.constant 0 : i32
    %c0_i32_0 = arith.constant 0 : i32
    %c0_i32_1 = arith.constant 0 : i32
    return %c0_i32, %c0_i32_0 : i32, i32
  }
  func.func @transform_4(%arg0: i32, %arg1: i32) -> (i32, i32) {
    %c0_i32 = arith.constant 0 : i32
    %c0_i32_0 = arith.constant 0 : i32
    %c0_i32_1 = arith.constant 0 : i32
    return %c0_i32, %c0_i32_0 : i32, i32
  }
  func.func @transform_5(%arg0: i32, %arg1: i32) -> (i32, i32) {
    %c0_i32 = arith.constant 0 : i32
    %c0_i32_0 = arith.constant 0 : i32
    %c0_i32_1 = arith.constant 0 : i32
    return %c0_i32, %c0_i32_0 : i32, i32
  }
  func.func @transform_6(%arg0: i32, %arg1: i32) -> (i32, i32) {
    %c0_i32 = arith.constant 0 : i32
    %c0_i32_0 = arith.constant 0 : i32
    %c0_i32_1 = arith.constant 0 : i32
    return %c0_i32, %c0_i32_0 : i32, i32
  }
  func.func @transform_7(%arg0: i32, %arg1: i32) -> (i32, i32) {
    %c0_i32 = arith.constant 0 : i32
    %c0_i32_0 = arith.constant 0 : i32
    %c0_i32_1 = arith.constant 0 : i32
    return %c0_i32, %c0_i32_0 : i32, i32
  }
  func.func @transform_8(%arg0: i32, %arg1: i32) -> (i32, i32, i32) {
    %c0_i32 = arith.constant 0 : i32
    %c0_i32_0 = arith.constant 0 : i32
    return %arg0, %c0_i32, %arg1 : i32, i32, i32
  }
}

</mosaic_0001>

<bundles_post_ra>
// kernel: _lambda_.1
= control target key start
LH: loop header
LB: loop body
LE: loop exit
PB: predicated region body
PF: predicated region fallthrough
CT: control target
= control target key end

     0   :  { %s1701_s27 = smov 0   ;;  %s1703_s28 = smov 0   ;;  %s2392_s0 = inlined_call_operand.vmem [shape: f32[2,1,4,290], index: 0, kind: input, shape index: {}]   ;;  %s2393_s1 = inlined_call_operand.vmem [shape: f32[24,4], index: 1, kind: input, shape index: {}]   ;;  %s2394_s2 = inlined_call_operand.vmem [shape: f32[24,1], index: 2, kind: input, shape index: {}]   ;;  %s2395_s3 = inlined_call_operand.vmem [shape: f32[24,9], index: 3, kind: input, shape index: {}]   ;;  %s2396_s4 = inlined_call_operand.vmem [shape: f32[24,1], index: 4, kind: input, shape index: {}]   ;;  %s2397_s5 = inlined_call_operand.vmem [shape: f32[8,24], index: 5, kind: input, shape index: {}]   ;;  %s2398_s6 = inlined_call_operand.vmem [shape: f32[8,1], index: 6, kind: input, shape index: {}]   ;;  %s2399_s7 = inlined_call_operand.vmem [shape: f32[2,256], index: 7, kind: input, shape index: {}]   ;;  %s2400_s8 = inlined_call_operand.vmem [shape: f32[2,8,256], index: 8, kind: output, shape index: {}]  }
   0x1   :  { %s1705_s29 = smov 0  }
   0x2 LB: > { %s30_s30 = sadd.s32 1, %s1626_s28  ;;  %p1502_p0 = scmp.ge.s32.totalorder %s1630_s29, 1  ;;  %s1630_s29 = sphi %s1705_s29, %s18_s29   ;;  %s1626_s28 = sphi %s1703_s28, %s2412_s28   ;;  %s1622_s27 = sphi %s1701_s27, %s2411_s27  }
   0x3   : > { %p32_p1 = scmp.ge.s32.totalorder %s30_s30, 2  ;;  %p282_p2 = scmp.lt.s32.totalorder %s1630_s29, 3 }
   0x5   : > { %s2414_s30 = smov (%p32_p1, %s30_s30), 0  ;;  %p283_p3 = pnand %p1502_p0, %p282_p2 }
   0x7   : > { %286 = sbr.rel (%p283_p3) target bundleno = 702 (0x2be), region = 52 }
   0xc   : > { %v348_v0 = vld [vmem:[%s2394_s2] sm:$0xff]  ;;  %p324_p4 = scmp.lt.s32.totalorder %s1622_s27, 1  ;;  %v1632_v1 = vmov 0   ;;  %v1633_v2 = vmov 0.0   ;;  %vm1634_vm0 = vmmov 0   ;;  %v1731_v3 = vld [vmem:[%s2395_s3 + $0x10] sm:$0xff]  ;;  %v623_v5 = vlaneseq }
   0xd   : > { %1584 = vset.pattern.permute.xlu1 %v1632_v1  ;;  %1524 = vmatprep.subr.mxu1 %v1633_v2  ;;  %v1635_v4 = vmov 2   ;;  %vm379_vm1 = vcmask 1043456   ;;  %v1636_v6 = vmov 1   ;;  %v345_v7 = vld [vmem:[%s2393_s1] sm:$0xff]  ;;  %vm369_vm2 = vcmask 31744   ;;  %v1747_v11 = vld [vmem:[%s2395_s3 + $0x8] sm:$0xff] }
   0xe   : > { %353 = vperm.xlu1 %1584, %v348_v0   ;;  %s2416_s27 = smov (!%p324_p4, %s1622_s27), 1  ;;  %1526 = vmatprep.mubr.msk.f32.mxu1 %vm1634_vm0, %v1633_v2  ;;  %v1637_v12 = vmov 3   ;;  %v624_v13 = vshrl.u32 %v623_v5, 7  ;;  %v346_v14 = vld [vmem:[%s2393_s1 + $0x8] sm:$0xff]  ;;  %v347_v17 = vld [vmem:[%s2393_s1 + $0x10] sm:$0xff]  ;;  %v1780_v19 = vld [vmem:[%s2395_s3] sm:$0xff] }
   0xf   : > { %450 = vmatprep.mubr.f32.mxu0 %v1633_v2  ;;  %1586 = vset.pattern.permute.xlu0 %v1635_v4  ;;  %s1535_s13 = smul.u32 12, %s2416_s27  ;;  %v1515_v16 = vld [vmem:[%s2399_s7 + $0x1] ss:$2 sm:$0x3]  ;;  %s1638_s11 = smov 2   ;;  %v1639_v21 = vmov 4  }
  0x10   : > { %730 = vperm.xlu0 %1586, %v1731_v3   ;;  %v629_v15 = vsub.s32 1, %v624_v13  ;;  %v589_v20 = vld [vmem:[%s2399_s7] ss:$2 sm:$0x3]  ;;  %v625_v22 = vsub.s32 0, %v624_v13  ;;  %s1640_s14 = smov 16  }
  0x11   : > { %s332_s16 = scalar_lea.vmem %s2392_s0, %s1535_s13  ;;  %v1641_v25 = vmov 5   ;;  %s1642_s15 = smov 18   ;;  %v1643_v27 = vmov 6   ;;  %v1645_v28 = vmov 7   ;;  %v1646_v29 = vmov 8   ;;  %v350_v30 = vld [vmem:[%s2394_s2 + $0x10] sm:$0xff] }
  0x12   : > { %1585 = vset.pattern.permute.xlu1 %v1636_v6  ;;  %v344_v8 = vld [vmem:[%s332_s16 + $0x8] sm:$0xf]  ;;  %v343_v9 = vld [vmem:[%s332_s16] sm:$0xff]  ;;  %v1771_v18 = vrot.slane %v1515_v16, %v629_v15  ;;  %v1789_v23 = vrot.slane %v589_v20, %v629_v15  ;;  %v746_v24 = vrot.slane %v1515_v16, %v625_v22  ;;  %v1797_v26 = vrot.slane %v589_v20, %v625_v22  ;;  %s1644_s16 = smov 32   ;;  %s1647_s21 = smov 34   ;;  %v1290_v32 = vld [vmem:[%s2396_s4 + $0x10] sm:$0xff] }
  0x13   : > { %663 = vperm.xlu1 %1585, %v1731_v3   ;;  %1525 = vmatpush3.msk.msra.mxu1 %vm379_vm1, %v344_v8  ;;  %v368_v10 = vcombine.high %v343_v9, %v343_v9  ;;  %v349_v31 = vld [vmem:[%s2394_s2 + $0x8] sm:$0xff]  ;;  %v1288_v34 = vld [vmem:[%s2396_s4] sm:$0xff]  ;;  %vm569_vm3 = vcmask 277504   ;;  %vm585_vm4 = vcmask 269448   ;;  %vm581_vm5 = vcmask 138248   ;;  %s1648_s10 = smov 111  }
  0x14   : > { %1588 = vset.pattern.permute.xlu0 %v1637_v12  ;;  %1527 = vmatmul.mubr.msk.f32.vlgmr.msra.gmra.mxu1 %vm369_vm2, %v345_v7  ;;  %v1289_v33 = vld [vmem:[%s2396_s4 + $0x8] sm:$0xff]  ;;  %s1650_s12 = smov 126   ;;  %s1651_s13 = smov 95   ;;  %vm840_vm6 = vcmask 130048   ;;  %vm992_vm7 = vcmask 146432   ;;  %vm1077_vm8 = vcmask 261120  }
  0x15   : > { %824 = vperm.xlu0 %1588, %v1731_v3   ;;  %1506 = vmatprep.subr.msk.mxu0 %vm379_vm1, %v368_v10  ;;  %vm755_vm9 = vcmask 15360   ;;  %s1655_s17 = smov 94   ;;  %vm702_vm10 = vcmask 1039360   ;;  %vm881_vm11 = vcmask 916480   ;;  %vm948_vm12 = vcmask 908288   ;;  %s1519_s22 = sshll.u32 %s2416_s27, 4 }
  0x16   : > { %1529 = vmatprep.mubr.msk.f32.mxu1 %vm1634_vm0, %v1633_v2  ;;  %1507 = vmatpush1.msk.msra.mxu0 %vm379_vm1, %v343_v9  ;;  %vm1033_vm13 = vcmask 900096   ;;  %vm1118_vm14 = vcmask 785408   ;;  %vm796_vm15 = vcmask 1031168   ;;  %vm1269_vm1 = vcmask 769024   ;;  %s341_s25 = scalar_lea.vmem %s2400_s8, %s1519_s22 }
  0x17   : > { %659 = vperm.xlu1 %1585, %v1747_v11   ;;  %1508 = vmatmul.mubr.msk.f32.vlgmr.msra.gmra.mxu0 %vm369_vm2, %v345_v7 }
  0x18   : > { %1530 = vmatmul.mubr.msk.f32.gmra.mxu1 %vm369_vm2, %v346_v14  ;;  %456 = vmatprep.mubr.f32.mxu0 %v1633_v2 }
  0x19   : > { %1532 = vmatprep.mubr.msk.f32.mxu1 %vm1634_vm0, %v1633_v2  ;;  %820 = vperm.xlu0 %1588, %v1747_v11   ;;  %vm1185_vm0 = vcmask 777216  }
  0x1b   : > { %1587 = vset.pattern.permute.xlu1 %v1635_v4  ;;  %1509 = vmatmul.mubr.msk.f32.gmra.mxu0 %vm369_vm2, %v346_v14 }
  0x1c   : > { %726 = vperm.xlu1 %1587, %v1747_v11   ;;  %1533 = vmatmul.mubr.msk.f32.gmra.mxu1 %vm369_vm2, %v347_v17 }
  0x1d   : > { %462 = vmatprep.mubr.f32.mxu0 %v1633_v2  ;;  %753 = vrot.lane.b32.xlu0 %v1771_v18, %s1638_s11 }
  0x1e   : > { %1592 = vset.pattern.permute.xlu0 %v1639_v21 }
  0x1f   : > { %1510 = vmatmul.mubr.msk.f32.gmra.mxu0 %vm369_vm2, %v347_v17  ;;  %vm1331_vm2 = vcmask 195584  }
  0x20   : > { %1589 = vset.pattern.permute.xlu1 %v1636_v6  ;;  %1399 = vmatprep.mubr.f32.mxu0 %v1633_v2 }
  0x21   : > { %655 = vperm.xlu1 %1589, %v1780_v19   ;;  %909 = vperm.xlu0 %1592, %v1731_v3  }
  0x25   : > { %1590 = vset.pattern.permute.xlu1 %v1635_v4  ;;  %838 = vrot.lane.b32.xlu0 %v1789_v23, %s1640_s14 }
  0x26   : > { %722 = vperm.xlu1 %1590, %v1780_v19   ;;  %1595 = vset.pattern.permute.xlu0 %v1641_v25 }
  0x29   : > { %972 = vperm.xlu0 %1595, %v1747_v11  }
  0x2a   : > { %751 = vrot.lane.b32.xlu1 %v746_v24, %s1638_s11  ;;  %s1649_s11 = smov 127  }
  0x2b   : > { %1591 = vset.pattern.permute.xlu1 %v1637_v12 }
  0x2d   : > { %968 = vperm.xlu0 %1595, %v1780_v19  }
  0x2e   : > { %816 = vperm.xlu1 %1591, %v1780_v19  }
  0x31   : > { %988 = vrot.lane.b32.xlu0 %v746_v24, %s1642_s15 }
  0x32   : > { %1593 = vset.pattern.permute.xlu1 %v1641_v25  ;;  %1599 = vset.pattern.permute.xlu0 %v1643_v27 }
  0x33   : > { %976 = vperm.xlu1 %1593, %v1731_v3  }
  0x35   : > { %1053 = vperm.xlu0 %1599, %v1780_v19  }
  0x37   : > { %836 = vrot.lane.b32.xlu1 %v1797_v26, %s1640_s14  ;;  %s1652_s14 = smov 112  }
  0x38   : > { %1594 = vset.pattern.permute.xlu1 %v1639_v21 }
  0x39   : > { %1073 = vrot.lane.b32.xlu0 %v1797_v26, %s1644_s16 }
  0x3a   : > { %1602 = vset.pattern.permute.xlu0 %v1645_v28 }
  0x3b   : > { %905 = vperm.xlu1 %1594, %v1747_v11  }
  0x3d   : > { %1142 = vperm.xlu0 %1602, %v1747_v11  }
  0x3f   : > { %1596 = vset.pattern.permute.xlu1 %v1643_v27 }
  0x40   : > { %1061 = vperm.xlu1 %1596, %v1731_v3  }
  0x41   : > { %1604 = vset.pattern.permute.xlu0 %v1646_v29 }
  0x42   : > { %1205 = vperm.xlu0 %1604, %v1780_v19  }
  0x44   : > { %1597 = vset.pattern.permute.xlu1 %v1639_v21 }
  0x45   : > { %901 = vperm.xlu1 %1597, %v1780_v19  }
  0x46   : > { %1605 = vset.pattern.permute.xlu0 %v1632_v1 }
  0x47   : > { %363 = vperm.xlu0 %1605, %v350_v30  }
  0x49   : > { %1598 = vset.pattern.permute.xlu1 %v1643_v27 }
  0x4a   : > { %1057 = vperm.xlu1 %1598, %v1747_v11  }
  0x4b   : > { %358 = vperm.xlu0 %1605, %v349_v31  }
  0x4e   : > { %990 = vrot.lane.b32.xlu1 %v1771_v18, %s1642_s15  ;;  %s1653_s15 = smov 110  }
  0x4f   : > { %1600 = vset.pattern.permute.xlu1 %v1645_v28  ;;  %613 = vperm.xlu0 %1605, %v1731_v3  }
  0x52   : > { %1146 = vperm.xlu1 %1600, %v1731_v3  }
  0x56   : > { %1601 = vset.pattern.permute.xlu1 %v1646_v29 }
  0x57   : > { %1213 = vperm.xlu1 %1601, %v1731_v3  }
  0x5b   : > { %1075 = vrot.lane.b32.xlu1 %v1789_v23, %s1644_s16  ;;  %s1654_s16 = smov 96  }
  0x5f   : > { %1209 = vperm.xlu1 %1601, %v1747_v11  }
  0x63   : > { %1603 = vset.pattern.permute.xlu1 %v1645_v28 }
  0x64   : > { %1138 = vperm.xlu1 %1603, %v1780_v19  }
  0x68   : > { %1225 = vrot.lane.b32.xlu1 %v746_v24, %s1647_s21 }
  0x69   : > { %1606 = vset.pattern.permute.xlu1 %v1632_v1 }
  0x6c   : > { %1227 = vrot.lane.b32.xlu1 %v1771_v18, %s1647_s21 }
  0x70   : > { %608 = vperm.xlu1 %1606, %v1747_v11  }
  0x74   : > { %603 = vperm.xlu1 %1606, %v1780_v19  }
  0x78   : > { %1303 = vperm.xlu1 %1606, %v1290_v32  }
  0x7c   : > { %1298 = vperm.xlu1 %1606, %v1289_v33  }
  0x80   : > { %1293 = vperm.xlu1 %1606, %v1288_v34  }
  0x89   : > { %v354_v35 = vpop.permute.xlu1 %353 }
  0x8b   : > { %v1836_v36 = vpop.permute.xlu0 %730 }
  0x8e   : > { %v1838_v37 = vpop.permute.xlu1 %663 }
  0x90   : > { %v1840_v38 = vpop.permute.xlu0 %824 }
  0x92   : > { %v1842_v39 = vpop.permute.xlu1 %659 }
  0x94   : > { %v1844_v40 = vpop.permute.xlu0 %820 }
  0x97   : > { %v1846_v41 = vpop.permute.xlu1 %726 }
  0x98   : > { %v1848_v42 = vpop.permute.xlu0 %753 }
  0x9c   : > { %v1850_v43 = vpop.permute.xlu1 %655  ;;  %v1852_v44 = vpop.permute.xlu0 %909 }
  0xa0   : > { %v1856_v46 = vpop.permute.xlu0 %838 }
  0xa1   : > { %v1854_v45 = vpop.permute.xlu1 %722 }
  0xa4   : > { %v1860_v48 = vpop.permute.xlu0 %972 }
  0xa5   : > { %v1858_v47 = vpop.permute.xlu1 %751 }
  0xa8   : > { %v1864_v50 = vpop.permute.xlu0 %968 }
  0xa9   : > { %v1862_v49 = vpop.permute.xlu1 %816 }
  0xac   : > { %v1870_v53 = vpop.permute.xlu0 %988 }
  0xae   : > { %v1866_v51 = vpop.permute.xlu1 %976 }
  0xb0   : > { %v1874_v55 = vpop.permute.xlu0 %1053 }
  0xb2   : > { %v1868_v52 = vpop.permute.xlu1 %836 }
  0xb4   : > { %v1878_v57 = vpop.permute.xlu0 %1073 }
  0xb6   : > { %v1872_v54 = vpop.permute.xlu1 %905 }
  0xb8   : > { %v1884_v60 = vpop.permute.xlu0 %1142 }
  0xbb   : > { %v1876_v56 = vpop.permute.xlu1 %1061 }
  0xbd   : > { %v1888_v62 = vpop.permute.xlu0 %1205 }
  0xc0   : > { %v1880_v58 = vpop.permute.xlu1 %901 }
  0xc2   : > { %v364_v0 = vpop.permute.xlu0 %363 }
  0xc5   : > { %v1882_v59 = vpop.permute.xlu1 %1057 }
  0xc6   : > { %v359_v7 = vpop.permute.xlu0 %358 }
  0xc9   : > { %v1886_v61 = vpop.permute.xlu1 %990 }
  0xcd   : > { %v1890_v63 = vpop.permute.xlu1 %1146 }
  0xd2   : > { %v1892_v1 = vpop.permute.xlu1 %1213 }
  0xd4   : > { %v535_v3 = vpop.f32.mrf.mxu1 }
  0xd5   : > { %v536_v4 = vadd.f32 %v535_v3, %v354_v35 }
  0xd6   : > { %v1894_v5 = vpop.permute.xlu1 %1075  ;;  %v1528_v6 = vpop.f32.mrf.mxu1 }
  0xd7   : > { %v551_v8 = vmax.f32 %v536_v4, 0.0  ;;  %v452_v9 = vpop.f32.mrf.mxu0 }
  0xd8   : > { %v453_v10 = vadd.f32 %v452_v9, %v354_v35  ;;  %v540_v11 = vpop.f32.mrf.mxu1 }
  0xd9   : > { %v560_v12 = vmin.f32 %v551_v8, 6.0  ;;  %v541_v13 = vadd.f32 %v540_v11, %v359_v7  ;;  %v454_v14 = vpop.f32.mrf.mxu0 }
  0xda   : > { %v1896_v15 = vpop.permute.xlu1 %1209  ;;  %v549_v16 = vmax.f32 %v453_v10, 0.0  ;;  %v455_v17 = vadd.f32 %v454_v14, %v354_v35  ;;  %v1531_v18 = vpop.f32.mrf.mxu1 }
  0xdb   : > { %570 = vst.msk [vmem:[#allocation2 + $0x10] sm:$0xff] %vm569_vm3, %v560_v12  ;;  %v554_v19 = vmax.f32 %v541_v13, 0.0  ;;  %v458_v20 = vpop.f32.mrf.mxu0 }
  0xdc   : > { %586 = vst.msk [vmem:[#allocation2 + $0x10] sm:$0xff] %vm585_vm4, %v1633_v2  ;;  %v558_v21 = vmin.f32 %v549_v16, 6.0  ;;  %v550_v22 = vmax.f32 %v455_v17, 0.0  ;;  %v459_v24 = vadd.f32 %v458_v20, %v359_v7  ;;  %v545_v25 = vpop.f32.mrf.mxu1 }
  0xdd   : > { %v563_v27 = vmin.f32 %v554_v19, 6.0  ;;  %v546_v28 = vadd.f32 %v545_v25, %v364_v0  ;;  %v460_v29 = vpop.f32.mrf.mxu0 }
  0xde   : > { %567 = vst [vmem:[#allocation2] sm:$0xff] %v558_v21  ;;  %v1901_v30 = vmin.f32 %v550_v22, 6.0  ;;  %v552_v31 = vmax.f32 %v459_v24, 0.0  ;;  %v461_v32 = vadd.f32 %v460_v29, %v359_v7  ;;  %v1534_v34 = vpop.f32.mrf.mxu1 }
  0xdf   : > { %v1903_v33 = vpop.permute.xlu1 %1138  ;;  %582 = vst.msk [vmem:[#allocation2] sm:$0xff] %vm581_vm5, %v1633_v2  ;;  %v557_v35 = vmax.f32 %v546_v28, 0.0  ;;  %v464_v3 = vpop.f32.mrf.mxu0 }
  0xe0   : > { %573 = vst.msk [vmem:[#allocation2 + $0x28] sm:$0xff] %vm569_vm3, %v563_v27  ;;  %v561_v4 = vmin.f32 %v552_v31, 6.0  ;;  %v553_v6 = vmax.f32 %v461_v32, 0.0  ;;  %v465_v8 = vadd.f32 %v464_v3, %v364_v0  ;;  %v1919_v16 = vmul.f32 %v1888_v62, %v1901_v30 }
  0xe1   : > { %587 = vst.msk [vmem:[#allocation2 + $0x28] sm:$0xff] %vm585_vm4, %v1633_v2  ;;  %v566_v9 = vmin.f32 %v557_v35, 6.0  ;;  %v466_v10 = vpop.f32.mrf.mxu0 }
  0xe2   : > { %571 = vst [vmem:[#allocation2 + $0x18] sm:$0xff] %v561_v4  ;;  %v1910_v7 = vmin.f32 %v553_v6, 6.0  ;;  %v555_v11 = vmax.f32 %v465_v8, 0.0  ;;  %v467_v12 = vadd.f32 %v466_v10, %v364_v0 }
  0xe3   : > { %v1912_v13 = vpop.permute.xlu1 %1225  ;;  %583 = vst.msk [vmem:[#allocation2 + $0x18] sm:$0xff] %vm581_vm5, %v1633_v2  ;;  %v647_v14 = vld [vmem:[#allocation2 + $0x10] sm:$0xff] }
  0xe4   : > { %576 = vst.msk [vmem:[#allocation2 + $0x40] sm:$0xff] %vm569_vm3, %v566_v9  ;;  %v564_v17 = vmin.f32 %v555_v11, 6.0  ;;  %v556_v18 = vmax.f32 %v467_v12, 0.0  ;;  %v1218_v19 = vmul.f32 %v1888_v62, %v647_v14  ;;  %v914_v0 = vmul.f32 %v1880_v58, %v647_v14 }
  0xe5   : > { %588 = vst.msk [vmem:[#allocation2 + $0x40] sm:$0xff] %vm585_vm4, %v1633_v2  ;;  %v668_v20 = vmul.f32 %v1850_v43, %v647_v14  ;;  %v735_v21 = vmul.f32 %v1854_v45, %v647_v14  ;;  %v1151_v31 = vmul.f32 %v1903_v33, %v647_v14 }
  0xe6   : > { %v1927_v22 = vld [vmem:[#allocation2] sm:$0xff]  ;;  %574 = vst [vmem:[#allocation2 + $0x30] sm:$0xff] %v564_v17  ;;  %v1929_v24 = vmin.f32 %v556_v18, 6.0  ;;  %934 = vrot.lane.b32.xlu1 %v914_v0, %s1648_s10  ;;  %v981_v17 = vmul.f32 %v1864_v50, %v647_v14 }
  0xe7   : > { %v1931_v25 = vpop.permute.xlu1 %1227  ;;  %v1935_v27 = vmul.f32 %v1903_v33, %v1927_v22  ;;  %584 = vst.msk [vmem:[#allocation2 + $0x30] sm:$0xff] %vm581_vm5, %v1633_v2  ;;  %v1216_v28 = vmul.f32 %v1888_v62, %v1927_v22  ;;  %688 = vrot.lane.b32.xlu0 %v668_v20, %s1649_s11  ;;  %v762_v34 = vmul.f32 %v1848_v42, %v735_v21 }
  0xe8   : > { %v1942_v29 = vmul.f32 %v1931_v25, %v1218_v19  ;;  %v829_v62 = vmul.f32 %v1862_v49, %v647_v14  ;;  %v666_v9 = vmul.f32 %v1850_v43, %v1927_v22  ;;  %v1982_v20 = vld [vmem:[#allocation2 + $0x28] sm:$0xff] }
  0xe9   : > { %2401 = vst [vmem:[#allocation3_spill] sm:$0xff] %v1935_v27  ;;  %v1948_v32 = vmul.f32 %v1912_v13, %v1216_v28  ;;  %v667_v28 = vmul.f32 %v1850_v43, %v1901_v30  ;;  %v980_v27 = vmul.f32 %v1864_v50, %v1901_v30 }
  0xea   : > { %v1951_v2 = vld [vmem:[#allocation2 + $0x18] sm:$0xff]  ;;  %782 = vrot.lane.b32.xlu1 %v762_v34, %s1650_s12  ;;  %v847_v12 = vmul.f32 %v1856_v46, %v829_v62  ;;  %v1066_v34 = vmul.f32 %v1874_v55, %v647_v14  ;;  %v1150_v62 = vmul.f32 %v1903_v33, %v1901_v30  ;;  %v2005_v14 = vmul.f32 %v1884_v60, %v1910_v7 }
  0xeb   : > { %2402 = vst [vmem:[#allocation4_spill] sm:$0xff] %v1948_v32  ;;  %v609_v35 = vpop.permute.xlu1 %608  ;;  %v1219_v3 = vmul.f32 %v1896_v15, %v1951_v2  ;;  %1171 = vrot.lane.b32.xlu0 %v1151_v31, %s1651_s13  ;;  %v999_v31 = vmul.f32 %v1886_v61, %v981_v17  ;;  %v1229_v33 = vsel %vm569_vm3, %v1912_v13, %v1931_v25 }
  0xec   : > { %v1957_v4 = vmul.f32 %v1951_v2, %v609_v35  ;;  %v1960_v6 = vmul.f32 %v609_v35, %v1910_v7  ;;  %v1069_v35 = vmul.f32 %v1882_v59, %v1982_v20  ;;  %v912_v17 = vmul.f32 %v1880_v58, %v1927_v22 }
  0xed   : > { %v1965_v8 = vmul.f32 %v1912_v13, %v1219_v3  ;;  %v827_v3 = vmul.f32 %v1862_v49, %v1927_v22 }
  0xee   : > { %2403 = vst [vmem:[#allocation5_spill] sm:$0xff] %v1957_v4  ;;  %2404 = vst [vmem:[#allocation6_spill] sm:$0xff] %v1960_v6  ;;  %v1969_v10 = vld [vmem:[#allocation2 + $0x30] sm:$0xff]  ;;  %684 = vrot.lane.b32.xlu1 %v666_v9, %s1649_s11  ;;  %v2001_v43 = vmul.f32 %v1894_v5, %v1069_v35  ;;  %v1084_v9 = vmul.f32 %v1894_v5, %v1066_v34  ;;  %v828_v35 = vmul.f32 %v1862_v49, %v1901_v30 }
  0xef   : > { %v604_v11 = vpop.permute.xlu1 %603  ;;  %v1222_v18 = vmul.f32 %v1892_v1, %v1969_v10  ;;  %867 = vrot.lane.b32.xlu0 %v847_v12, %s1652_s14  ;;  %v832_v12 = vmul.f32 %v1844_v40, %v1982_v20  ;;  %v917_v4 = vmul.f32 %v1872_v54, %v1982_v20 }
  0xf0   : > { %v1976_v19 = vmul.f32 %v1927_v22, %v604_v11  ;;  %v1979_v0 = vmul.f32 %v604_v11, %v1901_v30  ;;  %v845_v11 = vmul.f32 %v1868_v52, %v827_v3  ;;  %v834_v3 = vmul.f32 %v1840_v38, %v1929_v24 }
  0xf1   : > { %v1986_v21 = vmul.f32 %v1912_v13, %v1222_v18  ;;  %v2020_v18 = vmul.f32 %v1882_v59, %v1910_v7  ;;  %v2027_v13 = vmul.f32 %v1890_v63, %v1929_v24  ;;  %v850_v34 = vmul.f32 %v1856_v46, %v832_v12 }
  0xf2   : > { %686 = vrot.lane.b32.xlu1 %v667_v28, %s1649_s11  ;;  %v1220_v28 = vmul.f32 %v1896_v15, %v1910_v7  ;;  %v2048_v12 = vsel %vm992_vm7, %v1870_v53, %v1886_v61 }
  0xf3   : > { %2405 = vst [vmem:[#allocation7_spill] sm:$0xff] %v1986_v21  ;;  %1019 = vrot.lane.b32.xlu0 %v999_v31, %s1653_s15  ;;  %v913_v21 = vmul.f32 %v1880_v58, %v1901_v30 }
  0xf4   : > { %v2030_v31 = vmul.f32 %v1229_v33, %v1220_v28 }
  0xf6   : > { %1169 = vrot.lane.b32.xlu1 %v1150_v62, %s1651_s13  ;;  %v671_v62 = vmul.f32 %v1842_v39, %v1982_v20 }
  0xf7   : > { %1104 = vrot.lane.b32.xlu0 %v1084_v9, %s1654_s16  ;;  %v2042_v9 = vsel %vm840_vm6, %v1868_v52, %v1856_v46 }
  0xf8   : > { %v2052_v49 = vmul.f32 %v2042_v9, %v834_v3  ;;  %v846_v28 = vmul.f32 %v2042_v9, %v828_v35  ;;  %v2070_v3 = vsel %vm1077_vm8, %v1878_v57, %v1894_v5  ;;  %v2074_v35 = vmul.f32 %v1229_v33, %v1919_v16 }
  0xf9   : > { %v998_v16 = vmul.f32 %v2048_v12, %v980_v27  ;;  %v979_v27 = vmul.f32 %v1864_v50, %v1927_v22 }
  0xfa   : > { %863 = vrot.lane.b32.xlu1 %v845_v11, %s1652_s14  ;;  %v986_v11 = vmul.f32 %v1866_v51, %v1929_v24 }
  0xfb   : > { %930 = vrot.lane.b32.xlu0 %v912_v17, %s1648_s10  ;;  %v1223_v17 = vmul.f32 %v1892_v1, %v1929_v24 }
  0xfc   : > { %v2060_v6 = vmul.f32 %v2048_v12, %v986_v11 }
  0xfd   : > { %v2064_v32 = vmul.f32 %v1229_v33, %v1223_v17  ;;  %v1154_v33 = vmul.f32 %v1884_v60, %v1982_v20 }
  0xfe   : > { %873 = vrot.lane.b32.xlu1 %v850_v34, %s1652_s14  ;;  %v984_v34 = vmul.f32 %v1860_v48, %v1982_v20 }
  0xff   : > { %694 = vrot.lane.b32.xlu0 %v671_v62, %s1649_s11  ;;  %v1071_v62 = vmul.f32 %v1876_v56, %v1929_v24 }
 0x100   : > { %v1002_v17 = vmul.f32 %v1886_v61, %v984_v34 }
 0x101   : > { %v2078_v11 = vmul.f32 %v2070_v3, %v1071_v62  ;;  %v997_v62 = vmul.f32 %v1870_v53, %v979_v27  ;;  %v916_v27 = vmul.f32 %v1872_v54, %v1910_v7 }
 0x102   : > { %865 = vrot.lane.b32.xlu1 %v846_v28, %s1652_s14  ;;  %v733_v28 = vmul.f32 %v1854_v45, %v1927_v22 }
 0x103   : > { %940 = vrot.lane.b32.xlu0 %v917_v4, %s1648_s10  ;;  %v1065_v4 = vmul.f32 %v1874_v55, %v1901_v30 }
 0x104   : > { %v760_v34 = vmul.f32 %v1858_v47, %v733_v28 }
 0x105   : > { %v1083_v58 = vmul.f32 %v2070_v3, %v1065_v4  ;;  %v738_v4 = vmul.f32 %v1846_v41, %v1982_v20 }
 0x106   : > { %1025 = vrot.lane.b32.xlu1 %v1002_v17, %s1653_s15  ;;  %v1064_v17 = vmul.f32 %v1874_v55, %v1927_v22  ;;  %v734_v22 = vmul.f32 %v1854_v45, %v1901_v30  ;;  %v1221_v30 = vmul.f32 %v1896_v15, %v1982_v20  ;;  %v915_v15 = vmul.f32 %v1872_v54, %v1951_v2 }
 0x107   : > { %932 = vrot.lane.b32.xlu0 %v913_v21, %s1648_s10  ;;  %v669_v21 = vmul.f32 %v1842_v39, %v1951_v2  ;;  %v765_v55 = vmul.f32 %v1848_v42, %v738_v4 }
 0x108   : > { %v1082_v50 = vmul.f32 %v1878_v57, %v1064_v17  ;;  %v736_v17 = vmul.f32 %v1846_v41, %v1951_v2 }
 0x10a   : > { %1017 = vrot.lane.b32.xlu1 %v998_v16, %s1653_s15  ;;  %v1152_v16 = vmul.f32 %v1884_v60, %v1951_v2  ;;  %v2124_v60 = vsel %vm755_vm9, %v1858_v47, %v1848_v42 }
 0x10b   : > { %1177 = vrot.lane.b32.xlu0 %v1154_v33, %s1651_s13  ;;  %v653_v33 = vld [vmem:[#allocation2 + $0x40] sm:$0xff] }
 0x10c   : > { %v674_v28 = vmul.f32 %v1838_v37, %v653_v33  ;;  %v920_v45 = vmul.f32 %v1852_v44, %v653_v33 }
 0x10e   : > { %1102 = vrot.lane.b32.xlu1 %v1083_v58, %s1654_s16  ;;  %v670_v58 = vmul.f32 %v1842_v39, %v1910_v7  ;;  %v1238_v39 = vmul.f32 %v1931_v25, %v1221_v30 }
 0x10f   : > { %778 = vrot.lane.b32.xlu0 %v760_v34, %s1650_s12  ;;  %v761_v34 = vmul.f32 %v2124_v60, %v734_v22  ;;  %v835_v22 = vmul.f32 %v1840_v38, %v653_v33 }
 0x112   : > { %690 = vrot.lane.b32.xlu1 %v669_v21, %s1649_s11  ;;  %v830_v21 = vmul.f32 %v1844_v40, %v1951_v2 }
 0x113   : > { %1015 = vrot.lane.b32.xlu0 %v997_v62, %s1653_s15  ;;  %v1157_v62 = vmul.f32 %v1890_v63, %v653_v33 }
 0x114   : > { %v848_v20 = vmul.f32 %v1868_v52, %v830_v21 }
 0x116   : > { %1173 = vrot.lane.b32.xlu1 %v1152_v16, %s1651_s13  ;;  %v763_v16 = vmul.f32 %v1858_v47, %v736_v17 }
 0x117   : > { %1100 = vrot.lane.b32.xlu0 %v1082_v50, %s1654_s16  ;;  %v741_v50 = vmul.f32 %v1836_v36, %v653_v33 }
 0x11a   : > { %700 = vrot.lane.b32.xlu1 %v674_v28, %s1649_s11  ;;  %v737_v28 = vmul.f32 %v1846_v41, %v1910_v7 }
 0x11b   : > { %788 = vrot.lane.b32.xlu0 %v765_v55, %s1650_s12  ;;  %v768_v55 = vmul.f32 %v1848_v42, %v741_v50 }
 0x11e   : > { %692 = vrot.lane.b32.xlu1 %v670_v58, %s1649_s11  ;;  %v853_v58 = vmul.f32 %v1856_v46, %v835_v22  ;;  %v1086_v46 = vmul.f32 %v2070_v3, %v2020_v18  ;;  %v985_v18 = vmul.f32 %v1866_v51, %v1969_v10  ;;  %v1155_v3 = vmul.f32 %v1890_v63, %v1969_v10 }
 0x11f   : > { %780 = vrot.lane.b32.xlu0 %v761_v34, %s1650_s12  ;;  %v831_v34 = vmul.f32 %v1844_v40, %v1910_v7  ;;  %v983_v40 = vmul.f32 %v1860_v48, %v1910_v7  ;;  %v919_v63 = vmul.f32 %v1852_v44, %v1929_v24 }
 0x121   : > { %v849_v42 = vmul.f32 %v2042_v9, %v831_v34  ;;  %v1224_v9 = vmul.f32 %v1892_v1, %v653_v33 }
 0x122   : > { %946 = vrot.lane.b32.xlu1 %v920_v45, %s1648_s10  ;;  %v987_v45 = vmul.f32 %v1866_v51, %v653_v33 }
 0x123   : > { %1110 = vrot.lane.b32.xlu0 %v2001_v43, %s1654_s16  ;;  %v982_v43 = vmul.f32 %v1860_v48, %v1951_v2  ;;  %v1241_v48 = vmul.f32 %v1931_v25, %v1224_v9  ;;  %v740_v25 = vmul.f32 %v1836_v36, %v1929_v24 }
 0x124   : > { %v1005_v30 = vmul.f32 %v1886_v61, %v987_v45  ;;  %v833_v61 = vmul.f32 %v1840_v38, %v1969_v10  ;;  %v1003_v38 = vmul.f32 %v1870_v53, %v985_v18 }
 0x125   : > { %v1000_v54 = vmul.f32 %v1870_v53, %v982_v43  ;;  %v767_v51 = vmul.f32 %v2124_v60, %v740_v25  ;;  %v1070_v43 = vmul.f32 %v1876_v56, %v1969_v10  ;;  %v2409_v25 = vld [vmem:[#allocation5_spill] sm:$0xff] }
 0x126   : > { %938 = vrot.lane.b32.xlu1 %v916_v27, %s1648_s10  ;;  %v2194_v27 = vpop.permute.xlu1 %1303  ;;  %v851_v1 = vmul.f32 %v1868_v52, %v833_v61  ;;  %v2222_v52 = vpop.permute.xlu0 %613 }
 0x127   : > { %1261 = vrot.lane.b32.xlu0 %v1238_v39, %s1655_s17  ;;  %v673_v39 = vmul.f32 %v1838_v37, %v1929_v24 }
 0x12a   : > { %1175 = vrot.lane.b32.xlu1 %v2005_v14, %s1651_s13  ;;  %v1067_v14 = vmul.f32 %v1882_v59, %v1951_v2  ;;  %v764_v59 = vmul.f32 %v2124_v60, %v737_v28  ;;  %v1072_v2 = vmul.f32 %v1876_v56, %v653_v33  ;;  %v2203_v7 = vpop.permute.xlu1 %1298  ;;  %v1088_v56 = vmul.f32 %v1878_v57, %v1070_v43  ;;  %v2407_v28 = vld [vmem:[#allocation3_spill] sm:$0xff] }
 0x12b   : > { %936 = vrot.lane.b32.xlu0 %v915_v15, %s1648_s10  ;;  %v739_v15 = vmul.f32 %v1836_v36, %v1969_v10  ;;  %v633_v36 = vmul.f32 %v1797_v26, %v1976_v19 }
 0x12c   : > { %v1085_v4 = vmul.f32 %v1878_v57, %v1067_v14  ;;  %v1090_v41 = vmul.f32 %v1894_v5, %v1072_v2  ;;  %v1001_v5 = vmul.f32 %v2048_v12, %v983_v40  ;;  %v1325_v57 = vld [vmem:[%s2398_s6] sm:$0xff] }
 0x12e   : > { %869 = vrot.lane.b32.xlu1 %v848_v20, %s1652_s14  ;;  %v2217_v12 = vpop.permute.xlu1 %1293 }
 0x12f   : > { %1183 = vrot.lane.b32.xlu0 %v1157_v62, %s1651_s13 }
 0x132   : > { %1021 = vrot.lane.b32.xlu1 %v1000_v54, %s1653_s15 }
 0x133   : > { %784 = vrot.lane.b32.xlu0 %v763_v16, %s1650_s12 }
 0x136   : > { %1106 = vrot.lane.b32.xlu1 %v1085_v4, %s1654_s16 }
 0x137   : > { %794 = vrot.lane.b32.xlu0 %v768_v55, %s1650_s12 }
 0x13a   : > { %786 = vrot.lane.b32.xlu1 %v764_v59, %s1650_s12 }
 0x13b   : > { %879 = vrot.lane.b32.xlu0 %v853_v58, %s1652_s14 }
 0x13e   : > { %1116 = vrot.lane.b32.xlu1 %v1090_v41, %s1654_s16  ;;  %v2408_v41 = vld [vmem:[#allocation4_spill] sm:$0xff] }
 0x13f   : > { %871 = vrot.lane.b32.xlu0 %v849_v42, %s1652_s14 }
 0x142   : > { %1108 = vrot.lane.b32.xlu1 %v1086_v46, %s1654_s16 }
 0x143   : > { %1031 = vrot.lane.b32.xlu0 %v1005_v30, %s1653_s15 }
 0x146   : > { %1259 = vrot.lane.b32.xlu1 %v2030_v31, %s1655_s17  ;;  %v672_v31 = vmul.f32 %v1838_v37, %v1969_v10 }
 0x147   : > { %1023 = vrot.lane.b32.xlu0 %v1001_v5, %s1653_s15 }
 0x14a   : > { %1181 = vrot.lane.b32.xlu1 %v2027_v13, %s1651_s13  ;;  %v918_v13 = vmul.f32 %v1852_v44, %v1969_v10  ;;  %v634_v44 = vmul.f32 %v1789_v23, %v1979_v0  ;;  %v2406_v0 = vld [vmem:[#allocation7_spill] sm:$0xff] }
 0x14b   : > { %1267 = vrot.lane.b32.xlu0 %v1241_v48, %s1655_s17 }
 0x14e   : > { %875 = vrot.lane.b32.xlu1 %v851_v1, %s1652_s14 }
 0x14f   : > { %696 = vrot.lane.b32.xlu0 %v672_v31, %s1649_s11 }
 0x152   : > { %1027 = vrot.lane.b32.xlu1 %v1003_v38, %s1653_s15 }
 0x153   : > { %942 = vrot.lane.b32.xlu0 %v918_v13, %s1648_s10  ;;  %v635_v13 = vmul.f32 %v1797_v26, %v2409_v25 }
 0x156   : > { %792 = vrot.lane.b32.xlu1 %v767_v51, %s1650_s12  ;;  %v2410_v51 = vld [vmem:[#allocation6_spill] sm:$0xff] }
 0x157   : > { %1179 = vrot.lane.b32.xlu0 %v1155_v3, %s1651_s13  ;;  %v636_v3 = vmul.f32 %v1789_v23, %v2410_v51 }
 0x158   : > { %v935_v53 = vpop.permute.xlu1 %934 }
 0x159   : > { %v689_v33 = vpop.permute.xlu0 %688 }
 0x15a   : > { %877 = vrot.lane.b32.xlu1 %v2052_v49, %s1652_s14  ;;  %v766_v49 = vmul.f32 %v1858_v47, %v739_v15 }
 0x15b   : > { %698 = vrot.lane.b32.xlu0 %v673_v39, %s1649_s11 }
 0x15c   : > { %v2233_v60 = vpop.permute.xlu1 %782 }
 0x15d   : > { %v2235_v21 = vpop.permute.xlu0 %1171 }
 0x15e   : > { %1029 = vrot.lane.b32.xlu1 %v2060_v6, %s1653_s15 }
 0x15f   : > { %944 = vrot.lane.b32.xlu0 %v919_v63, %s1648_s10 }
 0x160   : > { %v685_v37 = vpop.permute.xlu1 %684 }
 0x161   : > { %v868_v20 = vpop.permute.xlu0 %867 }
 0x162   : > { %1265 = vrot.lane.b32.xlu1 %v2064_v32, %s1655_s17 }
 0x163   : > { %790 = vrot.lane.b32.xlu0 %v766_v49, %s1650_s12 }
 0x164   : > { %v687_v6 = vpop.permute.xlu1 %686 }
 0x165   : > { %v1020_v62 = vpop.permute.xlu0 %1019  ;;  %v703_v17 = vsel %vm702_vm10, %v685_v37, %v687_v6  ;;  %v704_v47 = vsel %vm702_vm10, %v687_v6, %v689_v33 }
 0x166   : > { %v715_v54 = vadd.f32 %v703_v17, %v633_v36  ;;  %v716_v14 = vadd.f32 %v704_v47, %v634_v44  ;;  %1257 = vrot.lane.b32.xlu1 %v1965_v8, %s1655_s17 }
 0x167   : > { %1112 = vrot.lane.b32.xlu0 %v1088_v56, %s1654_s16 }
 0x168   : > { %v2260_v32 = vpop.permute.xlu1 %1169 }
 0x169   : > { %v1105_v19 = vpop.permute.xlu0 %1104 }
 0x16a   : > { %1255 = vrot.lane.b32.xlu1 %v1942_v29, %s1655_s17 }
 0x16b   : > { %1263 = vrot.lane.b32.xlu0 %v2406_v0, %s1655_s17 }
 0x16c   : > { %v864_v16 = vpop.permute.xlu1 %863 }
 0x16d   : > { %v931_v50 = vpop.permute.xlu0 %930 }
 0x16e   : > { %1328 = vperm.xlu1 %1606, %v1325_v57  }
 0x16f   : > { %1114 = vrot.lane.b32.xlu0 %v2078_v11, %s1654_s16 }
 0x170   : > { %v2271_v8 = vpop.permute.xlu1 %873 }
 0x171   : > { %v695_v4 = vpop.permute.xlu0 %694 }
 0x173   : > { %1167 = vrot.lane.b32.xlu0 %v2407_v28, %s1651_s13 }
 0x174   : > { %v866_v29 = vpop.permute.xlu1 %865 }
 0x175   : > { %v2275_v55 = vpop.permute.xlu0 %940  ;;  %v882_v22 = vsel %vm881_vm11, %v864_v16, %v866_v29  ;;  %v883_v59 = vsel %vm881_vm11, %v866_v29, %v868_v20 }
 0x177   : > { %1253 = vrot.lane.b32.xlu0 %v2074_v35, %s1655_s17 }
 0x178   : > { %v2281_v2 = vpop.permute.xlu1 %1025 }
 0x179   : > { %v933_v11 = vpop.permute.xlu0 %932 }
 0x17a   : > { %v949_v58 = vsel %vm948_vm12, %v931_v50, %v933_v11  ;;  %v950_v34 = vsel %vm948_vm12, %v933_v11, %v935_v53 }
 0x17b   : > { %1251 = vrot.lane.b32.xlu0 %v2408_v41, %s1655_s17 }
 0x17c   : > { %v1018_v42 = vpop.permute.xlu1 %1017 }
 0x17d   : > { %v2287_v45 = vpop.permute.xlu0 %1177  ;;  %v1035_v46 = vsel %vm1033_vm13, %v1018_v42, %v1020_v62 }
 0x180   : > { %v1103_v30 = vpop.permute.xlu1 %1102 }
 0x181   : > { %v779_v35 = vpop.permute.xlu0 %778  ;;  %v1120_v40 = vsel %vm1118_vm14, %v1103_v30, %v1105_v19 }
 0x184   : > { %v691_v5 = vpop.permute.xlu1 %690 }
 0x185   : > { %v1016_v9 = vpop.permute.xlu0 %1015 }
 0x186   : > { %v1034_v61 = vsel %vm1033_vm13, %v1016_v9, %v1018_v42 }
 0x188   : > { %v2292_v48 = vpop.permute.xlu1 %1173 }
 0x189   : > { %v1101_v1 = vpop.permute.xlu0 %1100 }
 0x18a   : > { %v1119_v18 = vsel %vm1118_vm14, %v1101_v1, %v1103_v30 }
 0x18c   : > { %v2295_v31 = vpop.permute.xlu1 %700 }
 0x18d   : > { %v789_v38 = vpop.permute.xlu0 %788 }
 0x190   : > { %v693_v53 = vpop.permute.xlu1 %692 }
 0x191   : > { %v781_v33 = vpop.permute.xlu0 %780  ;;  %v705_v39 = vsel %vm702_vm10, %v691_v5, %v693_v53  ;;  %v706_v63 = vsel %vm702_vm10, %v693_v53, %v695_v4 }
 0x192   : > { %v797_v15 = vsel %vm796_vm15, %v779_v35, %v781_v33  ;;  %v798_v37 = vsel %vm796_vm15, %v781_v33, %v2233_v60  ;;  %v717_v20 = vadd.f32 %v705_v39, %v635_v13  ;;  %v718_v49 = vadd.f32 %v706_v63, %v636_v3 }
 0x193   : > { %v809_v43 = vadd.f32 %v797_v15, %v715_v54  ;;  %v810_v36 = vadd.f32 %v798_v37, %v716_v14  ;;  %v1187_v60 = vsel %vm1185_vm0, %v2260_v32, %v2235_v21 }
 0x194   : > { %v2306_v44 = vpop.permute.xlu1 %946 }
 0x195   : > { %v894_v6 = vadd.f32 %v882_v22, %v809_v43  ;;  %v895_v62 = vadd.f32 %v883_v59, %v810_v36  ;;  %v1111_v17 = vpop.permute.xlu0 %1110 }
 0x197   : > { %v961_v47 = vadd.f32 %v949_v58, %v894_v6  ;;  %v962_v56 = vadd.f32 %v950_v34, %v895_v62 }
 0x198   : > { %v939_v19 = vpop.permute.xlu1 %938 }
 0x199   : > { %v1262_v0 = vpop.permute.xlu0 %1261  ;;  %v1046_v57 = vadd.f32 %v1034_v61, %v961_v47  ;;  %v1047_v16 = vadd.f32 %v1035_v46, %v962_v56  ;;  %v952_v25 = vsel %vm948_vm12, %v939_v19, %v2275_v55 }
 0x19b   : > { %v2308_v50 = vadd.f32 %v1119_v18, %v1046_v57  ;;  %v1132_v4 = vadd.f32 %v1120_v40, %v1047_v16 }
 0x19c   : > { %v1176_v54 = vpop.permute.xlu1 %1175 }
 0x19d   : > { %v937_v14 = vpop.permute.xlu0 %936  ;;  %v2313_v28 = vadd.f32 %v1187_v60, %v1132_v4  ;;  %v1188_v62 = vsel %vm1185_vm0, %v2292_v48, %v1176_v54  ;;  %v1189_v47 = vsel %vm1185_vm0, %v1176_v54, %v2287_v45  ;;  %v620_v45 = vmul.f32 %v1969_v10, %v2222_v52 }
 0x19e   : > { %v951_v13 = vsel %vm948_vm12, %v937_v14, %v939_v19 }
 0x1a0   : > { %v870_v29 = vpop.permute.xlu1 %869 }
 0x1a1   : > { %v2315_v22 = vpop.permute.xlu0 %1183 }
 0x1a4   : > { %v1022_v59 = vpop.permute.xlu1 %1021 }
 0x1a5   : > { %v785_v11 = vpop.permute.xlu0 %784 }
 0x1a8   : > { %v1107_v58 = vpop.permute.xlu1 %1106 }
 0x1a9   : > { %v795_v34 = vpop.permute.xlu0 %794 }
 0x1ac   : > { %v787_v41 = vpop.permute.xlu1 %786 }
 0x1ad   : > { %v880_v42 = vpop.permute.xlu0 %879  ;;  %v800_v46 = vsel %vm796_vm15, %v787_v41, %v789_v38  ;;  %v799_v30 = vsel %vm796_vm15, %v785_v11, %v787_v41 }
 0x1ae   : > { %v812_v35 = vadd.f32 %v800_v46, %v718_v49  ;;  %v811_v21 = vadd.f32 %v799_v30, %v717_v20 }
 0x1b0   : > { %v2319_v40 = vpop.permute.xlu1 %1116 }
 0x1b1   : > { %v872_v5 = vpop.permute.xlu0 %871 }
 0x1b2   : > { %v884_v9 = vsel %vm881_vm11, %v870_v29, %v872_v5  ;;  %v885_v61 = vsel %vm881_vm11, %v872_v5, %v2271_v8 }
 0x1b3   : > { %v896_v1 = vadd.f32 %v884_v9, %v811_v21  ;;  %v897_v18 = vadd.f32 %v885_v61, %v812_v35  ;;  %v637_v35 = vmul.f32 %v1797_v26, %v620_v45 }
 0x1b4   : > { %v1109_v38 = vpop.permute.xlu1 %1108 }
 0x1b5   : > { %v1032_v51 = vpop.permute.xlu0 %1031  ;;  %v963_v3 = vadd.f32 %v951_v13, %v896_v1  ;;  %v964_v53 = vadd.f32 %v952_v25, %v897_v18  ;;  %v1121_v20 = vsel %vm1118_vm14, %v1107_v58, %v1109_v38  ;;  %v1122_v49 = vsel %vm1118_vm14, %v1109_v38, %v1111_v17 }
 0x1b8   : > { %v1260_v33 = vpop.permute.xlu1 %1259 }
 0x1b9   : > { %v1024_v39 = vpop.permute.xlu0 %1023 }
 0x1ba   : > { %v1036_v63 = vsel %vm1033_vm13, %v1022_v59, %v1024_v39  ;;  %v1037_v15 = vsel %vm1033_vm13, %v1024_v39, %v2281_v2  ;;  %v1273_v2 = vsel %vm1269_vm1, %v1260_v33, %v1262_v0  ;;  %v621_v59 = vmul.f32 %v2222_v52, %v1929_v24 }
 0x1bb   : > { %v1048_v37 = vadd.f32 %v1036_v63, %v963_v3  ;;  %v1049_v8 = vadd.f32 %v1037_v15, %v964_v53 }
 0x1bc   : > { %v1182_v55 = vpop.permute.xlu1 %1181  ;;  %v638_v0 = vmul.f32 %v1789_v23, %v621_v59 }
 0x1bd   : > { %v1133_v43 = vadd.f32 %v1121_v20, %v1048_v37  ;;  %v1134_v36 = vadd.f32 %v1122_v49, %v1049_v8  ;;  %v1268_v6 = vpop.permute.xlu0 %1267 }
 0x1bf   : > { %v1201_v56 = vadd.f32 %v1189_v47, %v1134_v36  ;;  %v1200_v19 = vadd.f32 %v1188_v62, %v1133_v43  ;;  %v1191_v36 = vsel %vm1185_vm0, %v1182_v55, %v2315_v22 }
 0x1c0   : > { %v876_v57 = vpop.permute.xlu1 %875 }
 0x1c1   : > { %v1285_v16 = vadd.f32 %v1273_v2, %v1201_v56  ;;  %v697_v4 = vpop.permute.xlu0 %696 }
 0x1c4   : > { %v1028_v60 = vpop.permute.xlu1 %1027 }
 0x1c5   : > { %v943_v17 = vpop.permute.xlu0 %942 }
 0x1c8   : > { %v793_v14 = vpop.permute.xlu1 %792 }
 0x1c9   : > { %v1180_v29 = vpop.permute.xlu0 %1179  ;;  %v802_v21 = vsel %vm796_vm15, %v793_v14, %v795_v34 }
 0x1ca   : > { %v1190_v62 = vsel %vm1185_vm0, %v1180_v29, %v1182_v55 }
 0x1cc   : > { %v878_v11 = vpop.permute.xlu1 %877 }
 0x1cd   : > { %v699_v58 = vpop.permute.xlu0 %698  ;;  %v886_v1 = vsel %vm881_vm11, %v876_v57, %v878_v11  ;;  %v887_v10 = vsel %vm881_vm11, %v878_v11, %v880_v42 }
 0x1ce   : > { %v708_v48 = vsel %vm702_vm10, %v699_v58, %v2295_v31  ;;  %v707_v46 = vsel %vm702_vm10, %v697_v4, %v699_v58  ;;  %v1309_v4 = vadd.f32 %v2203_v7, %v1285_v16 }
 0x1cf   : > { %v720_v54 = vadd.f32 %v708_v48, %v638_v0  ;;  %v719_v24 = vadd.f32 %v707_v46, %v637_v35 }
 0x1d0   : > { %v1030_v30 = vpop.permute.xlu1 %1029  ;;  %v1315_v16 = vmax.f32 %v1309_v4, 0.0 }
 0x1d1   : > { %v945_v41 = vpop.permute.xlu0 %944  ;;  %v814_v5 = vadd.f32 %v802_v21, %v720_v54  ;;  %v1038_v39 = vsel %vm1033_vm13, %v1028_v60, %v1030_v30  ;;  %v1039_v63 = vsel %vm1033_vm13, %v1030_v30, %v1032_v51 }
 0x1d2   : > { %v953_v13 = vsel %vm948_vm12, %v943_v17, %v945_v41  ;;  %v954_v26 = vsel %vm948_vm12, %v945_v41, %v2306_v44 }
 0x1d3   : > { %v899_v52 = vadd.f32 %v887_v10, %v814_v5  ;;  %v1324_v5 = vld [vmem:[%s2397_s5] sm:$0xff] }
 0x1d4   : > { %v1266_v23 = vpop.permute.xlu1 %1265 }
 0x1d5   : > { %v791_v9 = vpop.permute.xlu0 %790  ;;  %v966_v34 = vadd.f32 %v954_v26, %v899_v52 }
 0x1d6   : > { %v801_v61 = vsel %vm796_vm15, %v791_v9, %v793_v14 }
 0x1d7   : > { %v813_v31 = vadd.f32 %v801_v61, %v719_v24  ;;  %v1051_v15 = vadd.f32 %v1039_v63, %v966_v34 }
 0x1d8   : > { %v1258_v53 = vpop.permute.xlu1 %1257 }
 0x1d9   : > { %v898_v18 = vadd.f32 %v886_v1, %v813_v31  ;;  %v1113_v25 = vpop.permute.xlu0 %1112  ;;  %v1272_v42 = vsel %vm1269_vm1, %v1258_v53, %v1260_v33  ;;  %v1275_v33 = vsel %vm1269_vm1, %v1266_v23, %v1268_v6 }
 0x1da   : > { %v1284_v47 = vadd.f32 %v1272_v42, %v1200_v19 }
 0x1db   : > { %v965_v3 = vadd.f32 %v953_v13, %v898_v18 }
 0x1dc   : > { %v1256_v14 = vpop.permute.xlu1 %1255 }
 0x1dd   : > { %v1264_v38 = vpop.permute.xlu0 %1263  ;;  %v1050_v8 = vadd.f32 %v1038_v39, %v965_v3 }
 0x1de   : > { %v1274_v57 = vsel %vm1269_vm1, %v1264_v38, %v1266_v23 }
 0x1e1   : > { %v1115_v37 = vpop.permute.xlu0 %1114 }
 0x1e2   : > { %v1123_v20 = vsel %vm1118_vm14, %v1113_v25, %v1115_v37  ;;  %v1124_v49 = vsel %vm1118_vm14, %v1115_v37, %v2319_v40  ;;  %v1308_v40 = vadd.f32 %v2203_v7, %v1284_v47 }
 0x1e3   : > { %v1135_v43 = vadd.f32 %v1123_v20, %v1050_v8  ;;  %v1136_v44 = vadd.f32 %v1124_v49, %v1051_v15 }
 0x1e4   : > { %v1314_v48 = vmax.f32 %v1308_v40, 0.0 }
 0x1e5   : > { %v1202_v56 = vadd.f32 %v1190_v62, %v1135_v43  ;;  %v1203_v51 = vadd.f32 %v1191_v36, %v1136_v44  ;;  %v1168_v2 = vpop.permute.xlu0 %1167 }
 0x1e6   : > { %v1186_v19 = vsel %vm1185_vm0, %v1168_v2, %v2260_v32  ;;  %v1321_v32 = vmin.f32 %v1315_v16, 6.0  ;;  %v1320_v35 = vmin.f32 %v1314_v48, 6.0 }
 0x1e7   : > { %v1286_v60 = vadd.f32 %v1274_v57, %v1202_v56  ;;  %v1287_v17 = vadd.f32 %v1275_v33, %v1203_v51  ;;  %v1198_v45 = vadd.f32 %v1186_v19, %v2308_v50 }
 0x1e9   : > { %v1254_v59 = vpop.permute.xlu0 %1253  ;;  %v1311_v22 = vadd.f32 %v2194_v27, %v1287_v17  ;;  %v1310_v55 = vadd.f32 %v2194_v27, %v1286_v60  ;;  %v1329_v9 = vpop.permute.xlu1 %1328 }
 0x1ea   : > { %v1271_v29 = vsel %vm1269_vm1, %v1254_v59, %v1256_v14 }
 0x1eb   : > { %v1283_v6 = vadd.f32 %v1271_v29, %v2313_v28  ;;  %v1317_v11 = vmax.f32 %v1311_v22, 0.0  ;;  %v1316_v58 = vmax.f32 %v1310_v55, 0.0 }
 0x1ed   : > { %v1307_v7 = vadd.f32 %v2217_v12, %v1283_v6  ;;  %v1252_v0 = vpop.permute.xlu0 %1251  ;;  %v1323_v54 = vmin.f32 %v1317_v11, 6.0  ;;  %v1322_v41 = vmin.f32 %v1316_v58, 6.0 }
 0x1ee   : > { %v1270_v27 = vsel %vm1269_vm1, %v1252_v0, %v1254_v59 }
 0x1ef   : > { %v1282_v46 = vadd.f32 %v1270_v27, %v1198_v45  ;;  %1361 = vmatprep.subr.mxu0 %v1323_v54  ;;  %v1313_v30 = vmax.f32 %v1307_v7, 0.0 }
 0x1f0   : > { %1362 = vmatpush1.msra.mxu0 %v1322_v41 }
 0x1f1   : > { %v1306_v28 = vadd.f32 %v2217_v12, %v1282_v46  ;;  %1363 = vmatprep.subr.mxu0 %v1321_v32  ;;  %v1319_v21 = vmin.f32 %v1313_v30, 6.0 }
 0x1f2   : > { %1364 = vmatpush1.msra.mxu0 %v1320_v35 }
 0x1f3   : > { %v1312_v50 = vmax.f32 %v1306_v28, 0.0  ;;  %1365 = vmatprep.subr.mxu0 %v1319_v21 }
 0x1f5   : > { %v1318_v24 = vmin.f32 %v1312_v50, 6.0 }
 0x1f7   : > { %1366 = vmatpush1.msra.mxu0 %v1318_v24 }
 0x1f8   : > { %1516 = vmatmul.mubr.msk.f32.vlgmr.msra.gmra.mxu0 %vm1331_vm2, %v1324_v5 }
 0x2b8   : > { %v1401_v12 = vpop.f32.mrf.mxu0 }
 0x2b9   : > { %v1402_v61 = vadd.f32 %v1401_v12, %v1329_v9 }
 0x2ba   : > { %v1403_v31 = vpop.f32.mrf.mxu0 }
 0x2bb   : > { %1406 = vst [vmem:[%s341_s25] sm:$0xff] %v1402_v61  ;;  %v1404_v1 = vadd.f32 %v1403_v31, %v1329_v9 }
 0x2bd   : > { %1407 = vst [vmem:[%s341_s25 + $0x8] sm:$0xff] %v1404_v1 }
 0x2be PF: > { %s18_s29 = sadd.s32 1, %s1630_s29   ;;  %s2411_s27 = smov %s1626_s28 }
 0x2bf   : > { %p15_p5 = scmp.ge.s32.totalorder %s18_s29, 4   ;;  %s2412_s28 = smov %s2414_s30 }
 0x2c1   :  { %17 = sbr.rel (!%p15_p5) target bundleno = 2 (0x2), region = 87 }

</bundles_post_ra>
